<compile_context>
chip_gen: v7x
topology: tpu7x:2x2x1
jax: 0.10.0
libtpu: 0.0.40
codegen_flags: <defaults>
</compile_context>

<pallas_src>
import functools

import jax
import jax.numpy as jnp
from jax.experimental import pallas as pl
from jax.experimental.pallas import tpu as pltpu


def _pad16(n):
    return (n + 15) // 16 * 16


def _relu(x):
    return jnp.maximum(x, 0.0)


def _sigmoid_exact(x):
    return 1.0 / (1.0 + jnp.exp(-x))


def _sigmoid_approx(x):
    # exp + approximate reciprocal both run on the EUP slot (effectively free).
    return pl.reciprocal(1.0 + jnp.exp(-x), approx=True)


def _layout(input_dim, latent_dim):
    """Row/col layout of the single packed bf16 parameter buffer (128 lanes)."""
    D, L = input_dim, latent_dim
    L2, L4 = 2 * L, 4 * L
    stats_off = _pad16(D)                 # lane offset of [mu1|mu2|lv1|lv2]
    klw_off = stats_off + _pad16(L4)      # lanes >= klw_off: per-row sigmoid(aux)
    # TODO(synk): layout assumes input_dim and 4*latent_dim fit in the 128-lane
    # slab; wider models need a >128-col packing.
    assert D <= 128 and klw_off < 128, "model too wide for the 128-lane packing"

    # (name, in_features (matmul K), out_features, lane/col offset of the output)
    segs = [
        ("fc1",   D,   128, 0),
        ("fc2",   128, 64,  0),
        ("heads", 64,  L4,  stats_off),   # fused [mu1 | mu2 | lv1 | lv2]
        ("attn0", L2,  64,  0),
        ("attn2", 64,  L2,  0),
        ("aux0",  L2,  32,  0),
        ("aux2",  1,   32,  0),           # stored transposed as a (1, 32) row
        ("fc5",   L2,  64,  0),
        ("fc6",   64,  128, 0),
        ("fc7",   128, D,   0),
    ]
    offsets, in_rows, col_off = {}, {}, {}
    off = 0
    for name, k, _, c in segs:
        offsets[name] = off
        in_rows[name] = k
        col_off[name] = c
        off += _pad16(k)                  # 16-row alignment (bf16 sublane packing)
    bias_base = off
    bias_row = {name: i for i, (name, _, _, _) in enumerate(segs)}
    total_rows = bias_base + 16           # one 16-row bias block at the bottom
    return dict(segs=segs, offsets=offsets, in_rows=in_rows, col_off=col_off,
                bias_base=bias_base, bias_row=bias_row, total_rows=total_rows,
                stats_off=stats_off, klw_off=klw_off)


def init_params(input_dim, latent_dim, key):
    """Deterministic parameter init. Weights are (in, out), biases (1, out)."""
    dims = {
        "fc1": (input_dim, 128),
        "fc2": (128, 64),
        "fc3_mu1": (64, latent_dim),
        "fc3_logvar1": (64, latent_dim),
        "fc4_mu2": (64, latent_dim),
        "fc4_logvar2": (64, latent_dim),
        "attn0": (latent_dim * 2, 64),
        "attn2": (64, latent_dim * 2),
        "aux0": (latent_dim * 2, 32),
        "aux2": (32, 1),
        "fc5": (latent_dim * 2, 64),
        "fc6": (64, 128),
        "fc7": (128, input_dim),
    }
    params = {}
    for name, (fan_in, fan_out) in dims.items():
        key, kw, kb = jax.random.split(key, 3)
        bound = 1.0 / jnp.sqrt(fan_in)
        params[name + "_w"] = jax.random.uniform(
            kw, (fan_in, fan_out), jnp.float32, -bound, bound)
        params[name + "_b"] = jax.random.uniform(
            kb, (1, fan_out), jnp.float32, -bound, bound)
    return params


def pack_params(params, input_dim, latent_dim):
    """Pack all weights + biases into one (total_rows, 128) bf16 buffer."""
    lay = _layout(input_dim, latent_dim)
    heads_w = jnp.concatenate(
        [params["fc3_mu1_w"], params["fc4_mu2_w"],
         params["fc3_logvar1_w"], params["fc4_logvar2_w"]], axis=1)
    heads_b = jnp.concatenate(
        [params["fc3_mu1_b"], params["fc4_mu2_b"],
         params["fc3_logvar1_b"], params["fc4_logvar2_b"]], axis=1)
    seg_w = {
        "fc1": params["fc1_w"], "fc2": params["fc2_w"], "heads": heads_w,
        "attn0": params["attn0_w"], "attn2": params["attn2_w"],
        "aux0": params["aux0_w"], "aux2": params["aux2_w"].T,   # (1, 32)
        "fc5": params["fc5_w"], "fc6": params["fc6_w"], "fc7": params["fc7_w"],
    }
    seg_b = {
        "fc1": params["fc1_b"], "fc2": params["fc2_b"], "heads": heads_b,
        "attn0": params["attn0_b"], "attn2": params["attn2_b"],
        "aux0": params["aux0_b"], "aux2": params["aux2_b"],      # (1, 1)
        "fc5": params["fc5_b"], "fc6": params["fc6_b"], "fc7": params["fc7_b"],
    }
    buf = jnp.zeros((lay["total_rows"], 128), jnp.float32)
    for name, _, _, c0 in lay["segs"]:
        o = lay["offsets"][name]
        w = seg_w[name]
        buf = buf.at[o:o + w.shape[0], c0:c0 + w.shape[1]].set(w)
        r = lay["bias_base"] + lay["bias_row"][name]
        b = seg_b[name]
        buf = buf.at[r:r + 1, c0:c0 + b.shape[1]].set(b)
    return buf.astype(jnp.bfloat16), lay


def make_kernel(input_dim, latent_dim, lay):
    D, L = input_dim, latent_dim
    L2 = 2 * L
    offs, rows = lay["offsets"], lay["in_rows"]
    bias_base, brow = lay["bias_base"], lay["bias_row"]
    STATS, KLW = lay["stats_off"], lay["klw_off"]

    def kernel(act_ref, w_ref, out_ref):
        # One aligned load of the 16-row bias block, kept in f32 registers.
        bias_blk = w_ref[bias_base:bias_base + 16, :].astype(jnp.float32)

        def w(name):                 # full-128-lane bf16 weight tile (zero-padded cols)
            o = offs[name]
            return w_ref[o:o + rows[name], :]

        def b(name):                 # (1, 128) f32 bias row (zero-padded cols)
            i = brow[name]
            return bias_blk[i:i + 1, :]

        def lin(name, h):            # bf16 matmul, f32 accumulate, f32 bias add
            return jnp.dot(h.astype(jnp.bfloat16), w(name),
                           preferred_element_type=jnp.float32) + b(name)

        act = act_ref[...]                        # (BT, 128) f32 input slab
        x = act[:, :D]
        eps = act[:, STATS:STATS + L2]

        # ---- encode ----
        h1 = _relu(lin("fc1", x))                 # (BT, 128)
        h2 = _relu(lin("fc2", h1))                # (BT, 128), real cols 0:64
        heads = lin("heads", h2[:, :64])          # stats live at lanes STATS:STATS+4L
        mu_cat = heads[:, STATS:STATS + L2]
        lv_cat = heads[:, STATS + L2:STATS + 2 * L2]
        z = mu_cat + eps * jnp.exp(0.5 * lv_cat)  # reparameterize, (BT, 2L)

        # attention gate: z * Sigmoid(Linear(ReLU(Linear(z))))
        a = _relu(lin("attn0", z))                # (BT, 128), real cols 0:64
        g = _sigmoid_approx(lin("attn2", a[:, :64]))
        z = z * g[:, :L2]

        # aux head: per-row sigmoid(Linear32->1(ReLU(Linear(z))))
        ax = _relu(lin("aux0", z))                # (BT, 128), real cols 0:32, rest 0
        w_aux2 = w_ref[offs["aux2"]:offs["aux2"] + 1, :].astype(jnp.float32)
        ax2 = jnp.sum(ax * w_aux2, axis=1, keepdims=True) + b("aux2")[:, 0:1]
        ax2 = _sigmoid_approx(ax2)                # (BT, 1)

        # ---- decode ----
        d1 = _relu(lin("fc5", z))                 # (BT, 128), real cols 0:64
        d2 = _relu(lin("fc6", d1[:, :64]))        # (BT, 128)
        recon = _sigmoid_exact(lin("fc7", d2))    # (BT, 128), real cols 0:D

        # Single lane-dense output slab: [recon | stats | per-row klw term].
        lane = jax.lax.broadcasted_iota(jnp.int32, recon.shape, 1)
        out_ref[...] = jnp.where(lane < STATS, recon,
                                 jnp.where(lane < KLW, heads, ax2))

    return kernel


@functools.partial(jax.jit, static_argnames=("input_dim", "latent_dim"))
def hicvae_forward(x, eps_cat, param_buf, *, input_dim, latent_dim):
    B, D = x.shape
    assert D == input_dim
    L = latent_dim
    lay = _layout(input_dim, latent_dim)
    STATS, KLW = lay["stats_off"], lay["klw_off"]

    # Batch tiling: up to 256 rows per grid step; parameters stay VMEM-resident
    # (constant index_map). "parallel" lets v7x shard tiles across its 2 TCs.
    BT = min(256, max(8, -(-B // 8) * 8))
    Bp = -(-B // BT) * BT

    # One packed activation input slab: x at lanes [0, D), eps at [STATS, STATS+2L).
    act = jnp.zeros((Bp, 128), jnp.float32)
    act = act.at[:B, :D].set(x)
    act = act.at[:B, STATS:STATS + 2 * L].set(eps_cat)

    kernel = make_kernel(input_dim, latent_dim, lay)

    flops = 2 * Bp * (D * 128 + 128 * 64 + 64 * 4 * L + 2 * L * 64 + 64 * 2 * L
                      + 2 * L * 32 + 32 + 2 * L * 64 + 64 * 128 + 128 * D)
    transcendentals = Bp * (6 * L + 2 * D + 2)
    bytes_accessed = 2 * param_buf.size + 2 * 4 * Bp * 128

    out = pl.pallas_call(
        kernel,
        out_shape=jax.ShapeDtypeStruct((Bp, 128), jnp.float32),
        grid=(Bp // BT,),
        in_specs=[
            pl.BlockSpec((BT, 128), lambda i: (i, 0)),         # activation slab
            pl.BlockSpec(param_buf.shape, lambda i: (0, 0)),   # packed params (resident)
        ],
        out_specs=pl.BlockSpec((BT, 128), lambda i: (i, 0)),
        compiler_params=pltpu.CompilerParams(
            dimension_semantics=("parallel",)),
        cost_estimate=pl.CostEstimate(
            flops=flops, transcendentals=transcendentals,
            bytes_accessed=bytes_accessed),
    )(act, param_buf)

    recon = out[:B, :D]
    stats = out[:B, STATS:STATS + 4 * L]
    mu1, mu2 = stats[:, :L], stats[:, L:2 * L]
    lv1, lv2 = stats[:, 2 * L:3 * L], stats[:, 3 * L:4 * L]
    kl_w = jnp.mean(out[:B, KLW])
    return recon, mu1, lv1, mu2, lv2, kl_w


def reference_forward(x, eps1, eps2, params, *, bf16=False):
    """Pure-JAX reference mirroring the PyTorch module (same noise).

    bf16=True emulates the kernel's precision (bf16 weights/biases, bf16 matmul
    inputs with f32 accumulation); bf16=False is the exact f32 module."""
    if bf16:
        params = {k: v.astype(jnp.bfloat16).astype(jnp.float32)
                  for k, v in params.items()}
        cast = lambda h: h.astype(jnp.bfloat16)
    else:
        cast = lambda h: h

    def lin(name, h):
        return jnp.dot(cast(h), cast(params[name + "_w"]),
                       preferred_element_type=jnp.float32) + params[name + "_b"]

    h = jax.nn.relu(lin("fc1", x))
    h = jax.nn.relu(lin("fc2", h))
    mu1, lv1 = lin("fc3_mu1", h), lin("fc3_logvar1", h)
    mu2, lv2 = lin("fc4_mu2", h), lin("fc4_logvar2", h)
    z1 = mu1 + eps1 * jnp.exp(0.5 * lv1)
    z2 = mu2 + eps2 * jnp.exp(0.5 * lv2)
    z = jnp.concatenate([z1, z2], axis=1)
    z = z * jax.nn.sigmoid(lin("attn2", jax.nn.relu(lin("attn0", z))))
    klw = jnp.mean(jax.nn.sigmoid(lin("aux2", jax.nn.relu(lin("aux0", z)))))
    d = jax.nn.relu(lin("fc5", z))
    d = jax.nn.relu(lin("fc6", d))
    recon = jax.nn.sigmoid(lin("fc7", d))
    return recon, mu1, lv1, mu2, lv2, klw


if __name__ == "__main__":
    input_dim = 32
    latent_dim = 8
    batch = 8

    key = jax.random.PRNGKey(0)
    k_x, k_e1, k_e2, k_p = jax.random.split(key, 4)

    x = jax.random.uniform(k_x, (batch, input_dim), jnp.float32)   # VAE-style [0,1] data
    eps1 = jax.random.normal(k_e1, (batch, latent_dim), jnp.float32)
    eps2 = jax.random.normal(k_e2, (batch, latent_dim), jnp.float32)
    eps_cat = jnp.concatenate([eps1, eps2], axis=1)

    params = init_params(input_dim, latent_dim, k_p)
    param_buf, _ = pack_params(params, input_dim, latent_dim)

    outs = hicvae_forward(x, eps_cat, param_buf,
                          input_dim=input_dim, latent_dim=latent_dim)
    outs = jax.block_until_ready(outs)

    # Tight check against a reference that emulates the kernel's bf16 matmul
    # precision (residual differences: approx EUP reciprocal in the attention /
    # klw sigmoids and accumulation order).
    refs_bf16 = reference_forward(x, eps1, eps2, params, bf16=True)
    for got, ref in zip(outs, refs_bf16):
        assert jnp.allclose(got, ref, atol=5e-3, rtol=5e-3), (got, ref)

    # Looser check against the exact f32 module semantics (covers bf16 weight
    # quantization of ~10 tiny layers).
    refs_f32 = reference_forward(x, eps1, eps2, params, bf16=False)
    for got, ref in zip(outs, refs_f32):
        assert jnp.allclose(got, ref, atol=1e-1, rtol=1e-1), (got, ref)

    print("KERNEL_OK")
</pallas_src>

<mosaic_0001>
module attributes {stable_mosaic.version = 11 : i64} {
  func.func @kernel(%arg0: i32, %arg1: memref<8x128xf32, #tpu.memory_space<vmem>>, %arg2: memref<560x128xbf16, #tpu.memory_space<vmem>>, %arg3: memref<8x128xf32, #tpu.memory_space<vmem>>) attributes {dimension_semantics = [#tpu.dimension_semantics<parallel>], iteration_bounds = array<i64: 1>, scalar_prefetch = 0 : i64, scratch_operands = 0 : i64, tpu.core_type = #tpu.core_type<tc>, window_params = [{transform_indices = @transform_0, window_bounds = array<i64: 8, 128>}, {pipeline_mode = #tpu.pipeline_mode<synchronous>, transform_indices = @transform_1, window_bounds = array<i64: 560, 128>}, {transform_indices = @transform_2, window_bounds = array<i64: 8, 128>}]} {
    %c544 = arith.constant 544 : index
    %c0 = arith.constant 0 : index
    %0 = vector.load %arg2[%c544, %c0] : memref<560x128xbf16, #tpu.memory_space<vmem>>, vector<16x128xbf16>
    %1 = arith.extf %0 : vector<16x128xbf16> to vector<16x128xf32>
    %c0_0 = arith.constant 0 : index
    %c0_1 = arith.constant 0 : index
    %2 = vector.load %arg1[%c0_0, %c0_1] : memref<8x128xf32, #tpu.memory_space<vmem>>, vector<8x128xf32>
    %3 = vector.extract_strided_slice %2 {offsets = [0, 0], sizes = [8, 32], strides = [1, 1]} : vector<8x128xf32> to vector<8x32xf32>
    %4 = vector.extract_strided_slice %2 {offsets = [0, 32], sizes = [8, 16], strides = [1, 1]} : vector<8x128xf32> to vector<8x16xf32>
    %5 = arith.truncf %3 : vector<8x32xf32> to vector<8x32xbf16>
    %c0_2 = arith.constant 0 : index
    %c0_3 = arith.constant 0 : index
    %6 = vector.load %arg2[%c0_2, %c0_3] : memref<560x128xbf16, #tpu.memory_space<vmem>>, vector<32x128xbf16>
    %cst = arith.constant dense<0.000000e+00> : vector<8x128xf32>
    %7 = tpu.matmul %5, %6, %cst {dimension_numbers = #tpu.dot_dimension_numbers<[1], [0], [0], [1], [0, 0, 1, 1], [], []>} : vector<8x32xbf16>, vector<32x128xbf16>, vector<8x128xf32> -> vector<8x128xf32>
    %8 = vector.extract_strided_slice %1 {offsets = [0, 0], sizes = [1, 128], strides = [1, 1]} : vector<16x128xf32> to vector<1x128xf32>
    %9 = vector.broadcast %8 : vector<1x128xf32> to vector<8x128xf32>
    %10 = arith.addf %7, %9 : vector<8x128xf32>
    %cst_4 = arith.constant 0.000000e+00 : f32
    %11 = vector.broadcast %cst_4 : f32 to vector<8x128xf32>
    %12 = arith.maximumf %10, %11 : vector<8x128xf32>
    %13 = arith.truncf %12 : vector<8x128xf32> to vector<8x128xbf16>
    %c32 = arith.constant 32 : index
    %c0_5 = arith.constant 0 : index
    %14 = vector.load %arg2[%c32, %c0_5] : memref<560x128xbf16, #tpu.memory_space<vmem>>, vector<128x128xbf16>
    %cst_6 = arith.constant dense<0.000000e+00> : vector<8x128xf32>
    %15 = tpu.matmul %13, %14, %cst_6 {dimension_numbers = #tpu.dot_dimension_numbers<[1], [0], [0], [1], [0, 0, 1, 1], [], []>} : vector<8x128xbf16>, vector<128x128xbf16>, vector<8x128xf32> -> vector<8x128xf32>
    %16 = vector.extract_strided_slice %1 {offsets = [1, 0], sizes = [1, 128], strides = [1, 1]} : vector<16x128xf32> to vector<1x128xf32>
    %17 = vector.broadcast %16 : vector<1x128xf32> to vector<8x128xf32>
    %18 = arith.addf %15, %17 : vector<8x128xf32>
    %cst_7 = arith.constant 0.000000e+00 : f32
    %19 = vector.broadcast %cst_7 : f32 to vector<8x128xf32>
    %20 = arith.maximumf %18, %19 : vector<8x128xf32>
    %21 = vector.extract_strided_slice %20 {offsets = [0, 0], sizes = [8, 64], strides = [1, 1]} : vector<8x128xf32> to vector<8x64xf32>
    %22 = arith.truncf %21 : vector<8x64xf32> to vector<8x64xbf16>
    %c160 = arith.constant 160 : index
    %c0_8 = arith.constant 0 : index
    %23 = vector.load %arg2[%c160, %c0_8] : memref<560x128xbf16, #tpu.memory_space<vmem>>, vector<64x128xbf16>
    %cst_9 = arith.constant dense<0.000000e+00> : vector<8x128xf32>
    %24 = tpu.matmul %22, %23, %cst_9 {dimension_numbers = #tpu.dot_dimension_numbers<[1], [0], [0], [1], [0, 0, 1, 1], [], []>} : vector<8x64xbf16>, vector<64x128xbf16>, vector<8x128xf32> -> vector<8x128xf32>
    %25 = vector.extract_strided_slice %1 {offsets = [2, 0], sizes = [1, 128], strides = [1, 1]} : vector<16x128xf32> to vector<1x128xf32>
    %26 = vector.broadcast %25 : vector<1x128xf32> to vector<8x128xf32>
    %27 = arith.addf %24, %26 : vector<8x128xf32>
    %28 = vector.extract_strided_slice %27 {offsets = [0, 32], sizes = [8, 16], strides = [1, 1]} : vector<8x128xf32> to vector<8x16xf32>
    %29 = vector.extract_strided_slice %27 {offsets = [0, 48], sizes = [8, 16], strides = [1, 1]} : vector<8x128xf32> to vector<8x16xf32>
    %cst_10 = arith.constant 5.000000e-01 : f32
    %30 = vector.broadcast %cst_10 : f32 to vector<8x16xf32>
    %31 = arith.mulf %30, %29 : vector<8x16xf32>
    %32 = math.exp %31 : vector<8x16xf32>
    %33 = arith.mulf %4, %32 : vector<8x16xf32>
    %34 = arith.addf %28, %33 : vector<8x16xf32>
    %35 = arith.truncf %34 : vector<8x16xf32> to vector<8x16xbf16>
    %c224 = arith.constant 224 : index
    %c0_11 = arith.constant 0 : index
    %36 = vector.load %arg2[%c224, %c0_11] : memref<560x128xbf16, #tpu.memory_space<vmem>>, vector<16x128xbf16>
    %cst_12 = arith.constant dense<0.000000e+00> : vector<8x128xf32>
    %37 = tpu.matmul %35, %36, %cst_12 {dimension_numbers = #tpu.dot_dimension_numbers<[1], [0], [0], [1], [0, 0, 1, 1], [], []>} : vector<8x16xbf16>, vector<16x128xbf16>, vector<8x128xf32> -> vector<8x128xf32>
    %38 = vector.extract_strided_slice %1 {offsets = [3, 0], sizes = [1, 128], strides = [1, 1]} : vector<16x128xf32> to vector<1x128xf32>
    %39 = vector.broadcast %38 : vector<1x128xf32> to vector<8x128xf32>
    %40 = arith.addf %37, %39 : vector<8x128xf32>
    %cst_13 = arith.constant 0.000000e+00 : f32
    %41 = vector.broadcast %cst_13 : f32 to vector<8x128xf32>
    %42 = arith.maximumf %40, %41 : vector<8x128xf32>
    %43 = vector.extract_strided_slice %42 {offsets = [0, 0], sizes = [8, 64], strides = [1, 1]} : vector<8x128xf32> to vector<8x64xf32>
    %44 = arith.truncf %43 : vector<8x64xf32> to vector<8x64xbf16>
    %c240 = arith.constant 240 : index
    %c0_14 = arith.constant 0 : index
    %45 = vector.load %arg2[%c240, %c0_14] : memref<560x128xbf16, #tpu.memory_space<vmem>>, vector<64x128xbf16>
    %cst_15 = arith.constant dense<0.000000e+00> : vector<8x128xf32>
    %46 = tpu.matmul %44, %45, %cst_15 {dimension_numbers = #tpu.dot_dimension_numbers<[1], [0], [0], [1], [0, 0, 1, 1], [], []>} : vector<8x64xbf16>, vector<64x128xbf16>, vector<8x128xf32> -> vector<8x128xf32>
    %47 = vector.extract_strided_slice %1 {offsets = [4, 0], sizes = [1, 128], strides = [1, 1]} : vector<16x128xf32> to vector<1x128xf32>
    %48 = vector.broadcast %47 : vector<1x128xf32> to vector<8x128xf32>
    %49 = arith.addf %46, %48 : vector<8x128xf32>
    %cst_16 = arith.constant 0.000000e+00 : f32
    %50 = vector.broadcast %cst_16 : f32 to vector<8x128xf32>
    %51 = arith.subf %50, %49 : vector<8x128xf32>
    %52 = math.exp %51 : vector<8x128xf32>
    %cst_17 = arith.constant 1.000000e+00 : f32
    %53 = vector.broadcast %cst_17 : f32 to vector<8x128xf32>
    %54 = arith.addf %53, %52 : vector<8x128xf32>
    %55 = tpu.reciprocal %54 {approx = true} : vector<8x128xf32> -> vector<8x128xf32>
    %56 = vector.extract_strided_slice %55 {offsets = [0, 0], sizes = [8, 16], strides = [1, 1]} : vector<8x128xf32> to vector<8x16xf32>
    %57 = arith.mulf %34, %56 : vector<8x16xf32>
    %58 = arith.truncf %57 : vector<8x16xf32> to vector<8x16xbf16>
    %c304 = arith.constant 304 : index
    %c0_18 = arith.constant 0 : index
    %59 = vector.load %arg2[%c304, %c0_18] : memref<560x128xbf16, #tpu.memory_space<vmem>>, vector<16x128xbf16>
    %cst_19 = arith.constant dense<0.000000e+00> : vector<8x128xf32>
    %60 = tpu.matmul %58, %59, %cst_19 {dimension_numbers = #tpu.dot_dimension_numbers<[1], [0], [0], [1], [0, 0, 1, 1], [], []>} : vector<8x16xbf16>, vector<16x128xbf16>, vector<8x128xf32> -> vector<8x128xf32>
    %61 = vector.extract_strided_slice %1 {offsets = [5, 0], sizes = [1, 128], strides = [1, 1]} : vector<16x128xf32> to vector<1x128xf32>
    %62 = vector.broadcast %61 : vector<1x128xf32> to vector<8x128xf32>
    %63 = arith.addf %60, %62 : vector<8x128xf32>
    %cst_20 = arith.constant 0.000000e+00 : f32
    %64 = vector.broadcast %cst_20 : f32 to vector<8x128xf32>
    %65 = arith.maximumf %63, %64 : vector<8x128xf32>
    %c320 = arith.constant 320 : index
    %c0_21 = arith.constant 0 : index
    %66 = vector.load %arg2[%c320, %c0_21] : memref<560x128xbf16, #tpu.memory_space<vmem>>, vector<1x128xbf16>
    %67 = arith.extf %66 : vector<1x128xbf16> to vector<1x128xf32>
    %68 = vector.broadcast %67 : vector<1x128xf32> to vector<8x128xf32>
    %69 = arith.mulf %65, %68 : vector<8x128xf32>
    %cst_22 = arith.constant dense<0.000000e+00> : vector<8xf32>
    %70 = vector.multi_reduction <add>, %69, %cst_22 [1] : vector<8x128xf32> to vector<8xf32>
    %71 = vector.shape_cast %70 : vector<8xf32> to vector<8x1xf32>
    %72 = vector.extract_strided_slice %1 {offsets = [6, 0], sizes = [1, 128], strides = [1, 1]} : vector<16x128xf32> to vector<1x128xf32>
    %73 = vector.extract_strided_slice %72 {offsets = [0, 0], sizes = [1, 1], strides = [1, 1]} : vector<1x128xf32> to vector<1x1xf32>
    %74 = vector.broadcast %73 : vector<1x1xf32> to vector<8x1xf32>
    %75 = arith.addf %71, %74 : vector<8x1xf32>
    %cst_23 = arith.constant 0.000000e+00 : f32
    %76 = vector.broadcast %cst_23 : f32 to vector<8x1xf32>
    %77 = arith.subf %76, %75 : vector<8x1xf32>
    %78 = math.exp %77 : vector<8x1xf32>
    %cst_24 = arith.constant 1.000000e+00 : f32
    %79 = vector.broadcast %cst_24 : f32 to vector<8x1xf32>
    %80 = arith.addf %79, %78 : vector<8x1xf32>
    %81 = tpu.reciprocal %80 {approx = true} : vector<8x1xf32> -> vector<8x1xf32>
    %82 = arith.truncf %57 : vector<8x16xf32> to vector<8x16xbf16>
    %c336 = arith.constant 336 : index
    %c0_25 = arith.constant 0 : index
    %83 = vector.load %arg2[%c336, %c0_25] : memref<560x128xbf16, #tpu.memory_space<vmem>>, vector<16x128xbf16>
    %cst_26 = arith.constant dense<0.000000e+00> : vector<8x128xf32>
    %84 = tpu.matmul %82, %83, %cst_26 {dimension_numbers = #tpu.dot_dimension_numbers<[1], [0], [0], [1], [0, 0, 1, 1], [], []>} : vector<8x16xbf16>, vector<16x128xbf16>, vector<8x128xf32> -> vector<8x128xf32>
    %85 = vector.extract_strided_slice %1 {offsets = [7, 0], sizes = [1, 128], strides = [1, 1]} : vector<16x128xf32> to vector<1x128xf32>
    %86 = vector.broadcast %85 : vector<1x128xf32> to vector<8x128xf32>
    %87 = arith.addf %84, %86 : vector<8x128xf32>
    %cst_27 = arith.constant 0.000000e+00 : f32
    %88 = vector.broadcast %cst_27 : f32 to vector<8x128xf32>
    %89 = arith.maximumf %87, %88 : vector<8x128xf32>
    %90 = vector.extract_strided_slice %89 {offsets = [0, 0], sizes = [8, 64], strides = [1, 1]} : vector<8x128xf32> to vector<8x64xf32>
    %91 = arith.truncf %90 : vector<8x64xf32> to vector<8x64xbf16>
    %c352 = arith.constant 352 : index
    %c0_28 = arith.constant 0 : index
    %92 = vector.load %arg2[%c352, %c0_28] : memref<560x128xbf16, #tpu.memory_space<vmem>>, vector<64x128xbf16>
    %cst_29 = arith.constant dense<0.000000e+00> : vector<8x128xf32>
    %93 = tpu.matmul %91, %92, %cst_29 {dimension_numbers = #tpu.dot_dimension_numbers<[1], [0], [0], [1], [0, 0, 1, 1], [], []>} : vector<8x64xbf16>, vector<64x128xbf16>, vector<8x128xf32> -> vector<8x128xf32>
    %94 = vector.extract_strided_slice %1 {offsets = [8, 0], sizes = [1, 128], strides = [1, 1]} : vector<16x128xf32> to vector<1x128xf32>
    %95 = vector.broadcast %94 : vector<1x128xf32> to vector<8x128xf32>
    %96 = arith.addf %93, %95 : vector<8x128xf32>
    %cst_30 = arith.constant 0.000000e+00 : f32
    %97 = vector.broadcast %cst_30 : f32 to vector<8x128xf32>
    %98 = arith.maximumf %96, %97 : vector<8x128xf32>
    %99 = arith.truncf %98 : vector<8x128xf32> to vector<8x128xbf16>
    %c416 = arith.constant 416 : index
    %c0_31 = arith.constant 0 : index
    %100 = vector.load %arg2[%c416, %c0_31] : memref<560x128xbf16, #tpu.memory_space<vmem>>, vector<128x128xbf16>
    %cst_32 = arith.constant dense<0.000000e+00> : vector<8x128xf32>
    %101 = tpu.matmul %99, %100, %cst_32 {dimension_numbers = #tpu.dot_dimension_numbers<[1], [0], [0], [1], [0, 0, 1, 1], [], []>} : vector<8x128xbf16>, vector<128x128xbf16>, vector<8x128xf32> -> vector<8x128xf32>
    %102 = vector.extract_strided_slice %1 {offsets = [9, 0], sizes = [1, 128], strides = [1, 1]} : vector<16x128xf32> to vector<1x128xf32>
    %103 = vector.broadcast %102 : vector<1x128xf32> to vector<8x128xf32>
    %104 = arith.addf %101, %103 : vector<8x128xf32>
    %cst_33 = arith.constant 0.000000e+00 : f32
    %105 = vector.broadcast %cst_33 : f32 to vector<8x128xf32>
    %106 = arith.subf %105, %104 : vector<8x128xf32>
    %107 = math.exp %106 : vector<8x128xf32>
    %cst_34 = arith.constant 1.000000e+00 : f32
    %108 = vector.broadcast %cst_34 : f32 to vector<8x128xf32>
    %109 = arith.addf %108, %107 : vector<8x128xf32>
    %cst_35 = arith.constant 1.000000e+00 : f32
    %110 = vector.broadcast %cst_35 : f32 to vector<8x128xf32>
    %111 = arith.divf %110, %109 : vector<8x128xf32>
    %112 = tpu.iota {dimensions = array<i32: 1>} : vector<8x128xi32>
    %c32_i32 = arith.constant 32 : i32
    %113 = vector.broadcast %c32_i32 : i32 to vector<8x128xi32>
    %114 = arith.cmpi slt, %112, %113 : vector<8x128xi32>
    %c64_i32 = arith.constant 64 : i32
    %115 = vector.broadcast %c64_i32 : i32 to vector<8x128xi32>
    %116 = arith.cmpi slt, %112, %115 : vector<8x128xi32>
    %117 = vector.shape_cast %81 : vector<8x1xf32> to vector<8x1xf32>
    %118 = vector.broadcast %117 : vector<8x1xf32> to vector<8x128xf32>
    %119 = arith.select %116, %27, %118 : vector<8x128xi1>, vector<8x128xf32>
    %120 = arith.select %114, %111, %119 : vector<8x128xi1>, vector<8x128xf32>
    %c0_36 = arith.constant 0 : index
    %c0_37 = arith.constant 0 : index
    %121 = vector.load %arg3[%c0_36, %c0_37] : memref<8x128xf32, #tpu.memory_space<vmem>>, vector<8x128xf32>
    tpu.vector_store %arg3[%c0_36, %c0_37], %120 {strides = array<i32>} : memref<8x128xf32, #tpu.memory_space<vmem>>, vector<8x128xf32>,
    return
  }
  func.func @transform_0(%arg0: i32) -> (i32, i32) {
    %c0_i32 = arith.constant 0 : i32
    %c0_i32_0 = arith.constant 0 : i32
    return %arg0, %c0_i32 : i32, i32
  }
  func.func @transform_1(%arg0: i32) -> (i32, i32) {
    %c0_i32 = arith.constant 0 : i32
    %c0_i32_0 = arith.constant 0 : i32
    %c0_i32_1 = arith.constant 0 : i32
    return %c0_i32, %c0_i32_0 : i32, i32
  }
  func.func @transform_2(%arg0: i32) -> (i32, i32) {
    %c0_i32 = arith.constant 0 : i32
    %c0_i32_0 = arith.constant 0 : i32
    return %arg0, %c0_i32 : i32, i32
  }
}

</mosaic_0001>

<bundles_post_ra>
// kernel: hicvae_forward.1
= control target key start
LH: loop header
LB: loop body
LE: loop exit
PB: predicated region body
PF: predicated region fallthrough
CT: control target
= control target key end

     0   :  { %7 = vsyncpa [#allocation3], 0  ;;  %s1064_s9 = smov [#allocation2]   ;;  %s1210_s0 = inlined_call_operand.vmem [shape: f32[8,128], index: 0, kind: input, shape index: {}]   ;;  %s1211_s1 = inlined_call_operand.hbm [shape: bf16[560,128], index: 1, kind: input, shape index: {}]   ;;  %s1212_s2 = inlined_call_operand.vmem [shape: f32[8,128], index: 2, kind: output, shape index: {}]  }
   0x1   :  { %s15_s10 = sshll.u32 %s1064_s9, 4  ;;  %s1040_s13 = scalar_lea.hbm %s1211_s1, 4480  ;;  %s16_s10 = int_to_ptr.vmem [resolvable:$true] %s15_s10 }
   0x2   :  { %p1041_p0 = scmp.ne.s32.totalorder %s1211_s1, %s1040_s13  ;;  %p1044_p1 = scmp.lt.u32.totalorder %s1040_s13, %s1211_s1 }
   0x4   :  { %p1046_p2 = pnand %p1044_p1, %p1041_p0 }
   0x6   :  { %1049 = shalt.err (!%p1046_p2)
}
   0x7   :  { %s1050_s18 = scalar_lea.vmem %s16_s10, 4480  ;;  %p1055_p4 = scmp.lt.s32.totalorder %s16_s10, %s16_s10 }
   0x8   :  { %p1051_p3 = scmp.ne.s32.totalorder %s16_s10, %s1050_s18  ;;  %p1056_p5 = scmp.lt.s32.totalorder %s1050_s18, %s1050_s18 }
   0xa   :  { %p1057_p6 = por %p1056_p5, %p1055_p4 }
   0xc   :  { %p1058_p7 = pnand %p1057_p6, %p1051_p3 }
   0xe   :  { %1061 = shalt.err (!%p1058_p7)
}
   0xf   :  { %s1065_s19 = smov 64   ;;  %s1066_s20 = smov 4  }
  0x10   :  { %21 = dma.hbm_to_vmem [thread:$0]  %s1211_s1, 4480, %s16_s10, [#allocation3], %s1065_s19, %s1065_s19, %s1066_s20  }
  0x11   :  { %1062 = dma.done.wait [#allocation3], 4480  }
  0x12   :  { %1063 = vsyncadd [#allocation3], 4294962816  ;;  %v1067_v0 = vmov 0.0   ;;  %vm1068_vm0 = vmmov 0   ;;  %v993_v1 = vld [vmem:[#allocation2] sm:$0xff]   ;;  %v994_v2 = vld [vmem:[#allocation2 + $0x8] sm:$0xff]   ;;  %v36_v15 = vlaneseq }
  0x13   :  { %880 = vmatprep.subr.bf16.mxu0 %v1067_v0  ;;  %884 = vmatprep.mubr.msk.bf16.mxu0 %vm1068_vm0, %v1067_v0  ;;  %v1109_v3 = vld [vmem:[%s1210_s0] sm:$0xff]  ;;  %v995_v4 = vld [vmem:[#allocation2 + $0x10] sm:$0xff]   ;;  %v996_v6 = vld [vmem:[#allocation2 + $0x18] sm:$0xff]   ;;  %vm52_vm1 = vcmask 261120   ;;  %vm244_vm2 = vcmask 523264   ;;  %s1069_s0 = smov 112  }
  0x14   :  { %888 = vmatprep.subr.bf16.mxu1 %v1067_v0  ;;  %904 = vmatprep.mubr.msk.bf16.mxu1 %vm1068_vm0, %v1067_v0  ;;  %v31_v5 = vpack.c.bf16 %v1109_v3, %v1109_v3  ;;  %v997_v7 = vld [vmem:[#allocation2 + $0x20] sm:$0xff]   ;;  %v998_v8 = vld [vmem:[#allocation2 + $0x28] sm:$0xff]   ;;  %v999_v9 = vld [vmem:[#allocation2 + $0x30] sm:$0xff]   ;;  %v1128_v16 = vshrl.u32 %v36_v15, 7  ;;  %s1070_s1 = smov 96   ;;  %vm313_vm3 = vcmask 130048  }
  0x15   :  { %881 = vmatpush3.bf16.msra.mxu0 %v993_v1  ;;  %889 = vmatpush3.bf16.msra.mxu1 %v995_v4  ;;  %v1000_v10 = vld [vmem:[#allocation2 + $0x38] sm:$0xff]   ;;  %v1001_v11 = vld [vmem:[#allocation2 + $0x40] sm:$0xff]   ;;  %v1002_v12 = vld [vmem:[#allocation2 + $0x48] sm:$0xff]   ;;  %s1071_s25 = smov 32  }
  0x16   :  { %882 = vmatprep.subr.bf16.mxu0 %v1067_v0  ;;  %890 = vmatprep.subr.bf16.mxu1 %v1067_v0  ;;  %v1003_v13 = vld [vmem:[#allocation2 + $0x50] sm:$0xff]   ;;  %v1004_v14 = vld [vmem:[#allocation2 + $0x58] sm:$0xff]   ;;  %v1136_v19 = vsub.s32 0, %v1128_v16  ;;  %v1005_v28 = vld [vmem:[#allocation2 + $0x60] sm:$0xff]   ;;  %v116_v30 = vsub.s32 1, %v1128_v16  ;;  %v218_v39 = vsub.s32 2, %v1128_v16 }
  0x17   :  { %v1130_v17 = vld [vmem:[#allocation2 + $0x110] sm:$0xff]   ;;  %v1006_v29 = vld [vmem:[#allocation2 + $0x68] sm:$0xff]   ;;  %v1008_v54 = vld [vmem:[#allocation2 + $0x78] sm:$0xff]   ;;  %v302_v59 = vsub.s32 3, %v1128_v16 }
  0x18   :  { %v1133_v18 = vunpack.c.l.bf16 %v1130_v17  ;;  %v1007_v48 = vld [vmem:[#allocation2 + $0x70] sm:$0xff]   ;;  %v1009_v56 = vld [vmem:[#allocation2 + $0x80] sm:$0xff]   ;;  %v1010_v57 = vld [vmem:[#allocation2 + $0x88] sm:$0xff]  }
  0x19   :  { %883 = vmatpush3.bf16.msra.mxu0 %v994_v2  ;;  %891 = vmatpush3.bf16.msra.mxu1 %v996_v6  ;;  %v1011_v58 = vld [vmem:[#allocation2 + $0x90] sm:$0xff]  }
  0x1a   :  { %908 = vmatprep.subr.bf16.mxu0 %v1067_v0  ;;  %892 = vmatprep.subr.bf16.mxu1 %v1067_v0  ;;  %v39_v20 = vrot.slane %v1133_v18, %v1136_v19  ;;  %v117_v31 = vrot.slane %v1133_v18, %v116_v30  ;;  %v219_v40 = vrot.slane %v1133_v18, %v218_v39 }
  0x1b   :  { %v303_v60 = vrot.slane %v1133_v18, %v302_v59  ;;  %v1021_v59 = vld [vmem:[#allocation2 + $0xe8] sm:$0xff]  }
  0x1c   :  { %885 = vmatmul.mubr.msk.bf16.vlgmr.msra.gmra.mrb[0].mxu0 %vm52_vm1, %v31_v5  ;;  %v369_v5 = vsub.s32 4, %v1128_v16 }
  0x1d   :  { %916 = vmatprep.mubr.msk.bf16.mxu0 %vm1068_vm0, %v1067_v0  ;;  %893 = vmatpush3.bf16.msra.mxu1 %v997_v7 }
  0x1e   :  { %894 = vmatprep.subr.bf16.mxu1 %v1067_v0  ;;  %909 = vmatpush3.bf16.msra.mxu0 %v1003_v13  ;;  %v370_v6 = vrot.slane %v1133_v18, %v369_v5 }
  0x1f   :  { %910 = vmatprep.subr.bf16.mxu0 %v1067_v0 }
  0x21   :  { %895 = vmatpush3.bf16.msra.mxu1 %v998_v8 }
  0x22   :  { %896 = vmatprep.subr.bf16.mxu1 %v1067_v0  ;;  %911 = vmatpush3.bf16.msra.mxu0 %v1004_v14 }
  0x23   :  { %912 = vmatprep.subr.bf16.mxu0 %v1067_v0 }
  0x25   :  { %897 = vmatpush3.bf16.msra.mxu1 %v999_v9 }
  0x26   :  { %898 = vmatprep.subr.bf16.mxu1 %v1067_v0  ;;  %913 = vmatpush3.bf16.msra.mxu0 %v1005_v28 }
  0x27   :  { %914 = vmatprep.subr.bf16.mxu0 %v1067_v0 }
  0x29   :  { %899 = vmatpush3.bf16.msra.mxu1 %v1000_v10 }
  0x2a   :  { %900 = vmatprep.subr.bf16.mxu1 %v1067_v0  ;;  %915 = vmatpush3.bf16.msra.mxu0 %v1006_v29  ;;  %v1015_v29 = vld [vmem:[#allocation2 + $0xb8] sm:$0xff]  }
  0x2b   :  { %920 = vmatprep.subr.bf16.mxu0 %v1067_v0 }
  0x2d   :  { %901 = vmatpush3.bf16.msra.mxu1 %v1001_v11 }
  0x2e   :  { %902 = vmatprep.subr.bf16.mxu1 %v1067_v0 }
  0x31   :  { %903 = vmatpush3.bf16.msra.mxu1 %v1002_v12 }
  0x32   :  { %944 = vmatprep.subr.bf16.mxu1 %v1067_v0 }
  0xef   :  { %v90_v21 = vpop.f32.mrb[0].mxu0 }
  0xf0   :  { %v91_v22 = vadd.f32 %v90_v21, %v39_v20  ;;  %v886_v23 = vpop.f32.mrb[1].mxu0  ;;  %v1012_v21 = vld [vmem:[#allocation2 + $0xa8] sm:$0xff]  }
  0xf1   :  { %v93_v24 = vpop.f32.mrb[2].mxu0 }
  0xf2   :  { %v96_v25 = vmax.f32 %v91_v22, 0.0  ;;  %v887_v26 = vpop.f32.mrb[3].mxu0  ;;  %v1013_v22 = vld [vmem:[#allocation2 + $0x98] sm:$0xff]  }
  0xf4   :  { %v97_v27 = vpack.c.bf16 %v96_v25, %v96_v25 }
  0xf6   :  { %905 = vmatmul.mubr.bf16.vlgmr.msra.gmra.mrb[0].mxu1 %v97_v27  ;;  %v1014_v27 = vld [vmem:[#allocation2 + $0xb0] sm:$0xff]  }
  0xf7   :  { %946 = vmatprep.mubr.msk.bf16.mxu1 %vm1068_vm0, %v1067_v0  ;;  %945 = vmatpush3.bf16.msra.mxu1 %v1012_v21 }
  0xf8   :  { %962 = vmatprep.subr.bf16.mxu1 %v1067_v0 }
 0x1c9   :  { %v200_v32 = vpop.f32.mrb[0].mxu1 }
 0x1ca   :  { %v201_v33 = vadd.f32 %v200_v32, %v117_v31  ;;  %v906_v34 = vpop.f32.mrb[1].mxu1  ;;  %v1016_v31 = vld [vmem:[#allocation2 + $0xc0] sm:$0xff]   ;;  %v1017_v32 = vld [vmem:[#allocation2 + $0xc8] sm:$0xff]  }
 0x1cb   :  { %v203_v35 = vpop.f32.mrb[2].mxu1  ;;  %v531_v34 = vsub.s32 7, %v1128_v16 }
 0x1cc   :  { %v206_v36 = vmax.f32 %v201_v33, 0.0  ;;  %v907_v37 = vpop.f32.mrb[3].mxu1  ;;  %v453_v33 = vsub.s32 5, %v1128_v16  ;;  %v508_v35 = vld [vmem:[#allocation2 + $0xa0] sm:$0x1] }
 0x1cd   :  { %v532_v37 = vrot.slane %v1133_v18, %v531_v34 }
 0x1ce   :  { %v207_v38 = vpack.c.bf16 %v206_v36, %v206_v36  ;;  %v454_v36 = vrot.slane %v1133_v18, %v453_v33 }
 0x1d0   :  { %917 = vmatmul.mubr.msk.bf16.vlgmr.msra.gmra.mrb[4].mxu0 %vm244_vm2, %v207_v38  ;;  %v509_v38 = vunpack.c.l.bf16 %v508_v35 }
 0x1d1   :  { %922 = vmatprep.mubr.msk.bf16.mxu0 %vm1068_vm0, %v1067_v0  ;;  %921 = vmatpush3.bf16.msra.mxu0 %v1007_v48 }
 0x1d2   :  { %926 = vmatprep.subr.bf16.mxu0 %v1067_v0 }
 0x2a3   :  { %v282_v41 = vpop.f32.mrb[4].mxu0 }
 0x2a4   :  { %v1153_v42 = vadd.f32 %v282_v41, %v219_v40  ;;  %v918_v43 = vpop.f32.mrb[5].mxu0 }
 0x2a5   :  { %v285_v44 = vpop.f32.mrb[6].mxu0 }
 0x2a6   :  { %v288_v45 = vmul.f32 0.5, %v1153_v42  ;;  %v919_v46 = vpop.f32.mrb[7].mxu0 }
 0x2a7   :  { %v513_v46 = vrot.slane %v509_v38, %v1136_v19 }
 0x2a8   :  { %v289_v47 = vmul.f32 1.442695, %v288_v45 }
 0x2aa   :  { %1026 = vpow2.f32 %v289_v47 }
 0x2b4   :  { %v1027_v49 = vpop.eup %1026 }
 0x2b5   :  { %292 = vrot.lane.b32.xlu0 %v1027_v49, %s1069_s0 }
 0x327   :  { %v293_v50 = vpop.permute.xlu0 %292 }
 0x328   :  { %v295_v51 = vmul.f32 %v293_v50, %v1109_v3 }
 0x32a   :  { %v296_v52 = vadd.f32 %v295_v51, %v1153_v42 }
 0x32c   :  { %v297_v53 = vpack.c.bf16 %v296_v52, %v296_v52 }
 0x32e   :  { %305 = vrot.lane.b32.xlu0 %v297_v53, %s1070_s1 }
 0x3a0   :  { %v306_v55 = vpop.permute.xlu0 %305 }
 0x3a1   :  { %923 = vmatmul.mubr.msk.bf16.vlgmr.msra.gmra.mrb[8].mxu0 %vm313_vm3, %v306_v55  ;;  %v1072_v55 = vmov 0  }
 0x3a2   :  { %927 = vmatpush3.bf16.msra.mxu0 %v1008_v54  ;;  %934 = vmatprep.mubr.msk.bf16.mxu0 %vm1068_vm0, %v1067_v0 }
 0x3a3   :  { %928 = vmatprep.subr.bf16.mxu0 %v1067_v0  ;;  %991 = vset.pattern.permute.xlu1 %v1072_v55 }
 0x3a4   :  { %992 = vset.pattern.permute.xlu0 %v1072_v55 }
 0x3a6   :  { %929 = vmatpush3.bf16.msra.mxu0 %v1009_v56  ;;  %v1018_v56 = vld [vmem:[#allocation2 + $0xd0] sm:$0xff]  }
 0x3a7   :  { %930 = vmatprep.subr.bf16.mxu0 %v1067_v0 }
 0x3aa   :  { %931 = vmatpush3.bf16.msra.mxu0 %v1010_v57  ;;  %v1019_v57 = vld [vmem:[#allocation2 + $0xd8] sm:$0xff]  }
 0x3ab   :  { %932 = vmatprep.subr.bf16.mxu0 %v1067_v0 }
 0x3ae   :  { %933 = vmatpush3.bf16.msra.mxu0 %v1011_v58  ;;  %v1020_v58 = vld [vmem:[#allocation2 + $0xe0] sm:$0xff]  }
 0x3af   :  { %938 = vmatprep.subr.bf16.mxu0 %v1067_v0 }
 0x474   :  { %v351_v61 = vpop.f32.mrb[8].mxu0 }
 0x475   :  { %v352_v62 = vadd.f32 %v351_v61, %v303_v60  ;;  %v924_v63 = vpop.f32.mrb[9].mxu0  ;;  %v1022_v60 = vld [vmem:[#allocation2 + $0xf0] sm:$0xff]   ;;  %v1023_v61 = vld [vmem:[#allocation2 + $0xf8] sm:$0xff]  }
 0x476   :  { %v354_v1 = vpop.f32.mrb[10].mxu0  ;;  %v1025_v63 = vld [vmem:[#allocation2 + $0x108] sm:$0xff]  }
 0x477   :  { %v357_v2 = vmax.f32 %v352_v62, 0.0  ;;  %v925_v3 = vpop.f32.mrb[11].mxu0  ;;  %v1024_v62 = vld [vmem:[#allocation2 + $0x100] sm:$0xff]   ;;  %v519_v1 = vsub.s32 6, %v1128_v16 }
 0x479   :  { %v358_v4 = vpack.c.bf16 %v357_v2, %v357_v2  ;;  %v520_v2 = vrot.slane %v1133_v18, %v519_v1 }
 0x47b   :  { %935 = vmatmul.mubr.msk.bf16.vlgmr.msra.gmra.mrb[12].mxu0 %vm244_vm2, %v358_v4 }
 0x47c   :  { %940 = vmatprep.mubr.msk.bf16.mxu0 %vm1068_vm0, %v1067_v0  ;;  %939 = vmatpush3.bf16.msra.mxu0 %v1013_v22 }
 0x47d   :  { %950 = vmatprep.subr.bf16.mxu0 %v1067_v0 }
 0x54e   :  { %v432_v7 = vpop.f32.mrb[12].mxu0 }
 0x54f   :  { %v433_v8 = vadd.f32 %v432_v7, %v370_v6  ;;  %v936_v9 = vpop.f32.mrb[13].mxu0 }
 0x550   :  { %v435_v10 = vpop.f32.mrb[14].mxu0 }
 0x551   :  { %v438_v11 = vsub.f32 0.0, %v433_v8  ;;  %v937_v12 = vpop.f32.mrb[15].mxu0  ;;  %v836_v10 = vunpack.c.h.bf16 %v1130_v17 }
 0x553   :  { %v439_v13 = vmul.f32 1.442695, %v438_v11  ;;  %v681_v22 = vrot.slane %v836_v10, %v116_v30 }
 0x555   :  { %1028 = vpow2.f32 %v439_v13 }
 0x55f   :  { %v1029_v14 = vpop.eup %1028 }
 0x560   :  { %v441_v20 = vadd.f32 1.0, %v1029_v14 }
 0x562   :  { %1030 = vrcp.f32 %v441_v20 }
 0x56c   :  { %v1031_v23 = vpop.eup %1030 }
 0x56d   :  { %444 = vrot.lane.b32.xlu1 %v1031_v23, %s1071_s25 }
 0x5df   :  { %v445_v24 = vpop.permute.xlu1 %444 }
 0x5e0   :  { %v447_v25 = vmul.f32 %v445_v24, %v296_v52 }
 0x5e2   :  { %v448_v26 = vpack.c.bf16 %v447_v25, %v447_v25 }
 0x5e4   :  { %456 = vrot.lane.b32.xlu1 %v448_v26, %s1070_s1 }
 0x656   :  { %v457_v28 = vpop.permute.xlu1 %456 }
 0x657   :  { %941 = vmatmul.mubr.msk.bf16.vlgmr.msra.gmra.mrb[16].mxu0 %vm313_vm3, %v457_v28  ;;  %947 = vmatmul.mubr.msk.bf16.vlgmr.msra.gmra.mrb[4].mxu1 %vm313_vm3, %v457_v28 }
 0x658   :  { %951 = vmatpush3.bf16.msra.mxu0 %v1014_v27  ;;  %958 = vmatprep.mubr.msk.bf16.mxu0 %vm1068_vm0, %v1067_v0 }
 0x659   :  { %952 = vmatprep.subr.bf16.mxu0 %v1067_v0  ;;  %978 = vmatprep.mubr.msk.bf16.mxu1 %vm1068_vm0, %v1067_v0 }
 0x65a   :  { %963 = vmatpush3.bf16.msra.mxu1 %v1018_v56 }
 0x65b   :  { %964 = vmatprep.subr.bf16.mxu1 %v1067_v0 }
 0x65c   :  { %953 = vmatpush3.bf16.msra.mxu0 %v1015_v29 }
 0x65d   :  { %954 = vmatprep.subr.bf16.mxu0 %v1067_v0 }
 0x65e   :  { %965 = vmatpush3.bf16.msra.mxu1 %v1019_v57 }
 0x65f   :  { %966 = vmatprep.subr.bf16.mxu1 %v1067_v0 }
 0x660   :  { %955 = vmatpush3.bf16.msra.mxu0 %v1016_v31  ;;  %v777_v31 = vand.u32 127, %v36_v15 }
 0x661   :  { %956 = vmatprep.subr.bf16.mxu0 %v1067_v0 }
 0x662   :  { %967 = vmatpush3.bf16.msra.mxu1 %v1020_v58  ;;  %vm779_vm4 = vcmp.lt.s32.totalorder %v777_v31, 64  ;;  %vm778_vm5 = vcmp.lt.s32.totalorder %v777_v31, 32 }
 0x663   :  { %968 = vmatprep.subr.bf16.mxu1 %v1067_v0 }
 0x664   :  { %957 = vmatpush3.bf16.msra.mxu0 %v1017_v32 }
 0x666   :  { %969 = vmatpush3.bf16.msra.mxu1 %v1021_v59 }
 0x667   :  { %970 = vmatprep.subr.bf16.mxu1 %v1067_v0 }
 0x66a   :  { %971 = vmatpush3.bf16.msra.mxu1 %v1022_v60 }
 0x66b   :  { %972 = vmatprep.subr.bf16.mxu1 %v1067_v0 }
 0x66e   :  { %973 = vmatpush3.bf16.msra.mxu1 %v1023_v61 }
 0x66f   :  { %974 = vmatprep.subr.bf16.mxu1 %v1067_v0 }
 0x672   :  { %975 = vmatpush3.bf16.msra.mxu1 %v1024_v62 }
 0x673   :  { %976 = vmatprep.subr.bf16.mxu1 %v1067_v0  ;;  %v592_v0 = vrot.slane %v836_v10, %v1136_v19 }
 0x676   :  { %977 = vmatpush3.bf16.msra.mxu1 %v1025_v63 }
 0x72a   :  { %v501_v39 = vpop.f32.mrb[16].mxu0  ;;  %v573_v40 = vpop.f32.mrb[4].mxu1 }
 0x72b   :  { %v502_v41 = vadd.f32 %v501_v39, %v454_v36  ;;  %v574_v43 = vadd.f32 %v573_v40, %v532_v37  ;;  %v942_v44 = vpop.f32.mrb[17].mxu0  ;;  %v948_v45 = vpop.f32.mrb[5].mxu1 }
 0x72c   :  { %v504_v47 = vpop.f32.mrb[18].mxu0  ;;  %v576_v48 = vpop.f32.mrb[6].mxu1 }
 0x72d   :  { %v507_v49 = vmax.f32 %v502_v41, 0.0  ;;  %v579_v50 = vmax.f32 %v574_v43, 0.0  ;;  %v943_v51 = vpop.f32.mrb[19].mxu0  ;;  %v949_v52 = vpop.f32.mrb[7].mxu1 }
 0x72f   :  { %v580_v53 = vpack.c.bf16 %v579_v50, %v579_v50  ;;  %v514_v54 = vmul.f32 %v513_v46, %v507_v49 }
 0x731   :  { %515 = vadd.xlane.f32.xlu0 %v514_v54  ;;  %959 = vmatmul.mubr.msk.bf16.vlgmr.msra.gmra.mrb[20].mxu0 %vm244_vm2, %v580_v53 }
 0x7be   :  { %v516_v3 = vpop.xlane.xlu0 %515 }
 0x7bf   :  { %v521_v4 = vadd.f32 %v520_v2, %v516_v3 }
 0x7c1   :  { %v522_v5 = vsub.f32 0.0, %v521_v4 }
 0x7c3   :  { %v523_v6 = vmul.f32 1.442695, %v522_v5 }
 0x7c5   :  { %1032 = vpow2.f32 %v523_v6 }
 0x7cf   :  { %v1033_v7 = vpop.eup %1032 }
 0x7d0   :  { %v525_v8 = vadd.f32 1.0, %v1033_v7 }
 0x7d2   :  { %1034 = vrcp.f32 %v525_v8 }
 0x7dc   :  { %v1035_v9 = vpop.eup %1034 }
 0x7dd   :  { %782 = vperm.xlu1 %991, %v1035_v9  }
 0x804   :  { %v654_v11 = vpop.f32.mrb[20].mxu0 }
 0x805   :  { %v655_v12 = vadd.f32 %v654_v11, %v592_v0  ;;  %v960_v13 = vpop.f32.mrb[21].mxu0 }
 0x806   :  { %v657_v14 = vpop.f32.mrb[22].mxu0 }
 0x807   :  { %v660_v20 = vmax.f32 %v655_v12, 0.0  ;;  %v961_v18 = vpop.f32.mrb[23].mxu0 }
 0x809   :  { %v661_v21 = vpack.c.bf16 %v660_v20, %v660_v20 }
 0x80b   :  { %979 = vmatmul.mubr.bf16.vlgmr.msra.gmra.mrb[8].mxu1 %v661_v21 }
 0x85c   :  { %v783_v32 = vpop.permute.xlu1 %782 }
 0x85d   :  { %v785_v16 = vsel %vm779_vm4, %v1153_v42, %v783_v32 }
 0x8de   :  { %v764_v23 = vpop.f32.mrb[8].mxu1 }
 0x8df   :  { %v765_v24 = vadd.f32 %v764_v23, %v681_v22  ;;  %v980_v25 = vpop.f32.mrb[9].mxu1 }
 0x8e0   :  { %v767_v26 = vpop.f32.mrb[10].mxu1 }
 0x8e1   :  { %v770_v27 = vsub.f32 0.0, %v765_v24  ;;  %v981_v28 = vpop.f32.mrb[11].mxu1 }
 0x8e3   :  { %v771_v17 = vmul.f32 1.442695, %v770_v27 }
 0x8e5   :  { %1036 = vpow2.f32 %v771_v17 }
 0x8ef   :  { %v1037_v19 = vpop.eup %1036 }
 0x8f0   :  { %v773_v29 = vadd.f32 1.0, %v1037_v19 }
 0x8f2   :  { %1038 = vrcp.f32 %v773_v29 }
 0x8fc   :  { %v1039_v33 = vpop.eup %1038 }
 0x8fd   :  { %v786_v30 = vsel %vm778_vm5, %v1039_v33, %v785_v16 }
 0x8fe   :  { %787 = vst [vmem:[%s1212_s2] sm:$0xff] %v786_v30 }
 0x8ff   :  { %792 = vsyncpa [#allocation3], 1 }

</bundles_post_ra>
